<compile_context>
chip_gen: v5e
topology: v5e:2x2
jax: 0.10.0
libtpu: 0.0.40
codegen_flags: <defaults>
</compile_context>

<pallas_src>
import functools

import jax
import jax.numpy as jnp
from jax.experimental import pallas as pl
from jax.experimental.pallas import tpu as pltpu


def _round_up(v, m):
    return ((v + m - 1) // m) * m


def _fused_gcn_kernel(x_ref, adj_ref, w_ref, b_ref, o_ref, x_cur, h_buf, *, tm):
    """Fused multi-layer dense GCN.

    grid = (num_layers, num_row_tiles); the layer axis is outermost (sequential),
    the adjacency row-tile axis is innermost.

    x_ref  : (N_pad, D_pad) bf16  initial node features (resident, DMA'd once)
    adj_ref: (tm,    N_pad) bf16  row tile of the padded adjacency
    w_ref  : (D_pad, D_pad) bf16  this layer's weight (pre-transposed, zero-padded)
    b_ref  : (1,     D_pad) f32   this layer's bias (zero-padded)
    o_ref  : (tm,    D_pad) f32   output row tile (written only on the last layer)
    x_cur  : (N_pad, D_pad) bf16  VMEM scratch: running activation across layers
    h_buf  : (N_pad, D_pad) bf16  VMEM scratch: h = x @ W + b for the current layer
    """
    layer = pl.program_id(0)
    tile = pl.program_id(1)
    last_layer = pl.num_programs(0) - 1

    # Load the initial activation into the resident scratch exactly once.
    @pl.when((layer == 0) & (tile == 0))
    def _():
        x_cur[...] = x_ref[...]

    # Once per layer: dense part h = x @ W + b (f32 MXU accumulation).  Computed at
    # row tile 0 and reused by every adjacency row tile of this layer; the bias
    # broadcast therefore happens once per layer, not per tile.
    @pl.when(tile == 0)
    def _():
        h = jnp.dot(x_cur[...], w_ref[...], preferred_element_type=jnp.float32)
        h = h + b_ref[...]
        h_buf[...] = h.astype(jnp.bfloat16)

    # Aggregation for this row tile: out = adj[rows, :] @ h.
    out = jnp.dot(adj_ref[...], h_buf[...], preferred_element_type=jnp.float32)

    # Next layer's activation rows (ReLU).  Harmless on the last layer (unused).
    row0 = pl.multiple_of(tile * tm, tm)
    x_cur[pl.ds(row0, tm), :] = jnp.maximum(out, 0.0).astype(jnp.bfloat16)

    # Final layer: no ReLU, emit the lane-dense output tile.
    @pl.when(layer == last_layer)
    def _():
        o_ref[...] = out


def gcn_dae_dense_forward(x, adj, params):
    """Full GCN_DAE dense forward (eval mode) via one fused pallas_call.

    x:      (N, in_dim) float32
    adj:    (N, N) float32   (already symmetrized / normalized, as from get_adj)
    params: list of (W, b) with W stored as (D_in, D_out) (transposed nn.Linear.weight)
    """
    N, in_dim = x.shape
    num_layers = len(params)
    dims = [in_dim] + [w.shape[1] for w, _ in params]
    out_dim = dims[-1]

    LANE = 128
    ROW_TILE = 256  # large-N adjacency row tile; fits v7x's 64 MiB VMEM with headroom
    d_pad = _round_up(max(dims), LANE)
    if N <= ROW_TILE:
        n_pad = _round_up(N, LANE)
        tm = n_pad
    else:
        n_pad = _round_up(N, ROW_TILE)
        tm = ROW_TILE
    n_tiles = n_pad // tm

    # Zero-pad + cast to bf16 (lane-dense, MXU-native inputs).  Zero padding is exact:
    # padded adj rows/cols and padded feature columns contribute exactly zero.
    xp = jnp.zeros((n_pad, d_pad), jnp.bfloat16)
    xp = xp.at[:N, :in_dim].set(x.astype(jnp.bfloat16))
    adjp = jnp.zeros((n_pad, n_pad), jnp.bfloat16)
    adjp = adjp.at[:N, :N].set(adj.astype(jnp.bfloat16))

    wp = jnp.zeros((num_layers, d_pad, d_pad), jnp.bfloat16)
    bp = jnp.zeros((num_layers, 1, d_pad), jnp.float32)
    for li, (w, b) in enumerate(params):
        din, dout = w.shape
        wp = wp.at[li, :din, :dout].set(w.astype(jnp.bfloat16))
        bp = bp.at[li, 0, :dout].set(b.astype(jnp.float32))

    kernel = functools.partial(_fused_gcn_kernel, tm=tm)

    flops = num_layers * (2 * n_pad * d_pad * d_pad + 2 * n_pad * n_pad * d_pad)
    bytes_accessed = (
        2 * (xp.size + adjp.size + wp.size) + 4 * bp.size + 4 * n_pad * d_pad
    )
    cost = pl.CostEstimate(flops=flops, transcendentals=0, bytes_accessed=bytes_accessed)

    # VMEM budget: double-buffered pipeline blocks + the two resident scratches.
    est_vmem = (
        2 * tm * n_pad * 2        # adj row tiles (bf16)
        + 2 * d_pad * d_pad * 2   # per-layer weight (bf16)
        + 2 * d_pad * 4           # per-layer bias (f32)
        + 2 * n_pad * d_pad * 2   # resident x input (bf16)
        + 2 * tm * d_pad * 4      # output tiles (f32)
        + 2 * n_pad * d_pad * 2   # x_cur + h_buf scratches (bf16)
    )
    vmem_limit = int(min(max(4 * est_vmem, 8 * 2**20), 48 * 2**20))

    out_pad = pl.pallas_call(
        kernel,
        out_shape=jax.ShapeDtypeStruct((n_pad, d_pad), jnp.float32),
        grid=(num_layers, n_tiles),
        in_specs=[
            pl.BlockSpec((n_pad, d_pad), lambda l, i: (0, 0)),            # x (resident)
            pl.BlockSpec((tm, n_pad), lambda l, i: (i, 0)),               # adj row tile
            pl.BlockSpec((None, d_pad, d_pad), lambda l, i: (l, 0, 0)),   # W_l
            pl.BlockSpec((None, 1, d_pad), lambda l, i: (l, 0, 0)),       # b_l
        ],
        out_specs=pl.BlockSpec((tm, d_pad), lambda l, i: (i, 0)),
        scratch_shapes=[
            pltpu.VMEM((n_pad, d_pad), jnp.bfloat16),  # running activation
            pltpu.VMEM((n_pad, d_pad), jnp.bfloat16),  # per-layer h = x @ W + b
        ],
        compiler_params=pltpu.CompilerParams(
            # Both axes are sequential: layers depend on each other, and the per-layer
            # h (computed at row tile 0) is consumed by every row tile of that layer.
            # TODO(synk): a v7x 2-TensorCore split would need per-core row ranges plus
            # a cross-core barrier on h; not worth it at these problem sizes.
            dimension_semantics=("arbitrary", "arbitrary"),
            vmem_limit_bytes=vmem_limit,
        ),
        cost_estimate=cost,
    )(xp, adjp, wp, bp)

    return out_pad[:N, :out_dim]


def init_gcn_dae_params(key, in_dim, hid_dim, out_dim, nlayers):
    """nn.Linear-style init (uniform +/- 1/sqrt(fan_in)); weights stored (Din, Dout)."""
    dims = [in_dim] + [hid_dim] * (nlayers - 1) + [out_dim]
    params = []
    for li in range(nlayers):
        din, dout = dims[li], dims[li + 1]
        key, kw, kb = jax.random.split(key, 3)
        bound = 1.0 / (din ** 0.5)
        w = jax.random.uniform(kw, (din, dout), jnp.float32, -bound, bound)
        b = jax.random.uniform(kb, (dout,), jnp.float32, -bound, bound)
        params.append((w, b))
    return params


def gcn_dae_reference(x, adj, params, *, mimic_bf16):
    """Plain-JAX reference.  mimic_bf16=True applies the same bf16 input casts as
    the kernel (f32 accumulation); mimic_bf16=False is the exact f32 PyTorch math."""
    cast = (lambda a: a.astype(jnp.bfloat16)) if mimic_bf16 else (lambda a: a)
    adj_c = cast(adj)
    cur = cast(x)
    for li, (w, b) in enumerate(params):
        h = jnp.dot(cur, cast(w), preferred_element_type=jnp.float32) + b
        out = jnp.dot(adj_c, cast(h), preferred_element_type=jnp.float32)
        if li < len(params) - 1:
            cur = cast(jnp.maximum(out, 0.0))
        else:
            return out


if __name__ == "__main__":
    # Small shapes: N=16 nodes, in_dim=32, hid_dim=32, out_dim=8, nlayers=3.
    N, in_dim, hid_dim, out_dim, nlayers = 16, 32, 32, 8, 3

    key = jax.random.PRNGKey(0)
    key, kx, ka = jax.random.split(key, 3)

    x = jax.random.normal(kx, (N, in_dim), jnp.float32)

    # Dense adjacency, symmetrized + D^{-1/2} A D^{-1/2} normalized like get_adj().
    a = jax.random.uniform(ka, (N, N), jnp.float32)
    adj = (a + a.T) * 0.5
    inv_sqrt_deg = 1.0 / (jnp.sqrt(jnp.sum(adj, axis=1)) + 1e-10)
    adj = inv_sqrt_deg[:, None] * adj * inv_sqrt_deg[None, :]

    params = init_gcn_dae_params(key, in_dim, hid_dim, out_dim, nlayers)

    out = gcn_dae_dense_forward(x, adj, params)
    out = jax.block_until_ready(out)

    ref_bf16 = gcn_dae_reference(x, adj, params, mimic_bf16=True)
    ref_f32 = gcn_dae_reference(x, adj, params, mimic_bf16=False)

    assert out.shape == (N, out_dim)
    assert jnp.allclose(out, ref_bf16, atol=5e-3, rtol=5e-3), "mismatch vs bf16 reference"
    assert jnp.allclose(out, ref_f32, atol=5e-2, rtol=5e-2), "mismatch vs f32 reference"

    print("KERNEL_OK")
</pallas_src>

<mosaic_0001>
module attributes {stable_mosaic.version = 11 : i64} {
  func.func @_fused_gcn_kernel(%arg0: i32, %arg1: i32, %arg2: memref<128x128xbf16, #tpu.memory_space<vmem>>, %arg3: memref<128x128xbf16, #tpu.memory_space<vmem>>, %arg4: memref<1x128x128xbf16, #tpu.memory_space<vmem>>, %arg5: memref<1x1x128xf32, #tpu.memory_space<vmem>>, %arg6: memref<128x128xf32, #tpu.memory_space<vmem>>, %arg7: memref<128x128xbf16, #tpu.memory_space<vmem>>, %arg8: memref<128x128xbf16, #tpu.memory_space<vmem>>) attributes {dimension_semantics = [#tpu.dimension_semantics<arbitrary>, #tpu.dimension_semantics<arbitrary>], iteration_bounds = array<i64: 3, 1>, scalar_prefetch = 0 : i64, scratch_operands = 2 : i64, tpu.core_type = #tpu.core_type<tc>, window_params = [{pipeline_mode = #tpu.pipeline_mode<synchronous>, transform_indices = @transform_0, window_bounds = array<i64: 128, 128>}, {transform_indices = @transform_1, window_bounds = array<i64: 128, 128>}, {transform_indices = @transform_2, window_bounds = array<i64: 1, 128, 128>}, {transform_indices = @transform_3, window_bounds = array<i64: 1, 1, 128>}, {transform_indices = @transform_4, window_bounds = array<i64: 128, 128>}]} {
    %c0_i32 = arith.constant 0 : i32
    %0 = arith.cmpi eq, %arg0, %c0_i32 : i32
    %c0_i32_0 = arith.constant 0 : i32
    %1 = arith.cmpi eq, %arg1, %c0_i32_0 : i32
    %2 = arith.andi %0, %1 : i1
    %3 = arith.extui %2 : i1 to i32
    %c0_i32_1 = arith.constant 0 : i32
    %4 = arith.cmpi ne, %3, %c0_i32_1 : i32
    scf.if %4 {
      %c0_10 = arith.constant 0 : index
      %c0_11 = arith.constant 0 : index
      %21 = vector.load %arg2[%c0_10, %c0_11] : memref<128x128xbf16, #tpu.memory_space<vmem>>, vector<128x128xbf16>
      %c0_12 = arith.constant 0 : index
      %c0_13 = arith.constant 0 : index
      %22 = vector.load %arg7[%c0_12, %c0_13] : memref<128x128xbf16, #tpu.memory_space<vmem>>, vector<128x128xbf16>
      tpu.vector_store %arg7[%c0_12, %c0_13], %21 {strides = array<i32>} : memref<128x128xbf16, #tpu.memory_space<vmem>>, vector<128x128xbf16>,
    } else {
    }
    %c0_i32_2 = arith.constant 0 : i32
    %5 = arith.cmpi eq, %arg1, %c0_i32_2 : i32
    %6 = arith.extui %5 : i1 to i32
    %c0_i32_3 = arith.constant 0 : i32
    %7 = arith.cmpi ne, %6, %c0_i32_3 : i32
    scf.if %7 {
      %c0_10 = arith.constant 0 : index
      %c0_11 = arith.constant 0 : index
      %21 = vector.load %arg7[%c0_10, %c0_11] : memref<128x128xbf16, #tpu.memory_space<vmem>>, vector<128x128xbf16>
      %c0_12 = arith.constant 0 : index
      %c0_13 = arith.constant 0 : index
      %c0_14 = arith.constant 0 : index
      %22 = vector.load %arg4[%c0_12, %c0_13, %c0_14] : memref<1x128x128xbf16, #tpu.memory_space<vmem>>, vector<1x128x128xbf16>
      %23 = vector.shape_cast %22 : vector<1x128x128xbf16> to vector<128x128xbf16>
      %cst_15 = arith.constant dense<0.000000e+00> : vector<128x128xf32>
      %24 = tpu.matmul %21, %23, %cst_15 {dimension_numbers = #tpu.dot_dimension_numbers<[1], [0], [0], [1], [0, 0, 1, 1], [], []>} : vector<128x128xbf16>, vector<128x128xbf16>, vector<128x128xf32> -> vector<128x128xf32>
      %c0_16 = arith.constant 0 : index
      %c0_17 = arith.constant 0 : index
      %c0_18 = arith.constant 0 : index
      %25 = vector.load %arg5[%c0_16, %c0_17, %c0_18] : memref<1x1x128xf32, #tpu.memory_space<vmem>>, vector<1x1x128xf32>
      %26 = vector.shape_cast %25 : vector<1x1x128xf32> to vector<1x128xf32>
      %27 = vector.broadcast %26 : vector<1x128xf32> to vector<128x128xf32>
      %28 = arith.addf %24, %27 : vector<128x128xf32>
      %29 = arith.truncf %28 : vector<128x128xf32> to vector<128x128xbf16>
      %c0_19 = arith.constant 0 : index
      %c0_20 = arith.constant 0 : index
      %30 = vector.load %arg8[%c0_19, %c0_20] : memref<128x128xbf16, #tpu.memory_space<vmem>>, vector<128x128xbf16>
      tpu.vector_store %arg8[%c0_19, %c0_20], %29 {strides = array<i32>} : memref<128x128xbf16, #tpu.memory_space<vmem>>, vector<128x128xbf16>,
    } else {
    }
    %c0 = arith.constant 0 : index
    %c0_4 = arith.constant 0 : index
    %8 = vector.load %arg3[%c0, %c0_4] : memref<128x128xbf16, #tpu.memory_space<vmem>>, vector<128x128xbf16>
    %c0_5 = arith.constant 0 : index
    %c0_6 = arith.constant 0 : index
    %9 = vector.load %arg8[%c0_5, %c0_6] : memref<128x128xbf16, #tpu.memory_space<vmem>>, vector<128x128xbf16>
    %cst = arith.constant dense<0.000000e+00> : vector<128x128xf32>
    %10 = tpu.matmul %8, %9, %cst {dimension_numbers = #tpu.dot_dimension_numbers<[1], [0], [0], [1], [0, 0, 1, 1], [], []>} : vector<128x128xbf16>, vector<128x128xbf16>, vector<128x128xf32> -> vector<128x128xf32>
    %c128_i32 = arith.constant 128 : i32
    %11 = arith.muli %arg1, %c128_i32 : i32
    %12 = tpu.assume_multiple %11, 128 : i32
    %cst_7 = arith.constant 0.000000e+00 : f32
    %13 = vector.broadcast %cst_7 : f32 to vector<128x128xf32>
    %14 = arith.maximumf %10, %13 : vector<128x128xf32>
    %15 = arith.truncf %14 : vector<128x128xf32> to vector<128x128xbf16>
    %16 = arith.index_cast %12 : i32 to index
    %c0_8 = arith.constant 0 : index
    %17 = vector.load %arg7[%16, %c0_8] : memref<128x128xbf16, #tpu.memory_space<vmem>>, vector<128x128xbf16>
    tpu.vector_store %arg7[%16, %c0_8], %15 {strides = array<i32>} : memref<128x128xbf16, #tpu.memory_space<vmem>>, vector<128x128xbf16>,
    %c2_i32 = arith.constant 2 : i32
    %18 = arith.cmpi eq, %arg0, %c2_i32 : i32
    %19 = arith.extui %18 : i1 to i32
    %c0_i32_9 = arith.constant 0 : i32
    %20 = arith.cmpi ne, %19, %c0_i32_9 : i32
    scf.if %20 {
      %c0_10 = arith.constant 0 : index
      %c0_11 = arith.constant 0 : index
      %21 = vector.load %arg6[%c0_10, %c0_11] : memref<128x128xf32, #tpu.memory_space<vmem>>, vector<128x128xf32>
      tpu.vector_store %arg6[%c0_10, %c0_11], %10 {strides = array<i32>} : memref<128x128xf32, #tpu.memory_space<vmem>>, vector<128x128xf32>,
    } else {
    }
    return
  }
  func.func @transform_0(%arg0: i32, %arg1: i32) -> (i32, i32) {
    %c0_i32 = arith.constant 0 : i32
    %c0_i32_0 = arith.constant 0 : i32
    %c0_i32_1 = arith.constant 0 : i32
    return %c0_i32, %c0_i32_0 : i32, i32
  }
  func.func @transform_1(%arg0: i32, %arg1: i32) -> (i32, i32) {
    %c0_i32 = arith.constant 0 : i32
    %c0_i32_0 = arith.constant 0 : i32
    return %arg1, %c0_i32 : i32, i32
  }
  func.func @transform_2(%arg0: i32, %arg1: i32) -> (i32, i32, i32) {
    %c0_i32 = arith.constant 0 : i32
    %c0_i32_0 = arith.constant 0 : i32
    %c0_i32_1 = arith.constant 0 : i32
    return %arg0, %c0_i32, %c0_i32_0 : i32, i32, i32
  }
  func.func @transform_3(%arg0: i32, %arg1: i32) -> (i32, i32, i32) {
    %c0_i32 = arith.constant 0 : i32
    %c0_i32_0 = arith.constant 0 : i32
    %c0_i32_1 = arith.constant 0 : i32
    return %arg0, %c0_i32, %c0_i32_0 : i32, i32, i32
  }
  func.func @transform_4(%arg0: i32, %arg1: i32) -> (i32, i32) {
    %c0_i32 = arith.constant 0 : i32
    %c0_i32_0 = arith.constant 0 : i32
    return %arg1, %c0_i32 : i32, i32
  }
}

</mosaic_0001>

<bundles_post_ra>
// kernel: tpu_custom_call.1
= control target key start
LH: loop header
LB: loop body
LE: loop exit
PB: predicated region body
PF: predicated region fallthrough
CT: control target
= control target key end

     0   :  { %s1705_s0 = inlined_call_operand.hbm [shape: bf16[128,128], index: 0, kind: input, shape index: {}]   ;;  %s1706_s1 = inlined_call_operand.hbm [shape: bf16[128,128], index: 1, kind: input, shape index: {}]   ;;  %s1707_s2 = inlined_call_operand.hbm [shape: bf16[3,128,128], index: 2, kind: input, shape index: {}]   ;;  %s1708_s3 = inlined_call_operand.hbm [shape: f32[3,1,128], index: 3, kind: input, shape index: {}]   ;;  %s1709_s4 = inlined_call_operand.hbm [shape: f32[128,128], index: 4, kind: output, shape index: {}]  }
   0x1   :  { %1714 = sst [smem:[#allocation16_spill]] %s1705_s0 }
   0x2   :  { %9 = vsyncpa [#allocation5], 0 }
   0x3   :  { %10 = vsyncpa [#allocation8], 0 }
   0x4   :  { %11 = vsyncpa [#allocation6], 0  ;;  %s1541_s15 = smov 0   ;;  %s1543_s16 = smov 0  }
   0x5   :  { %s1545_s17 = smov 0   ;;  %s1547_s18 = smov 0  }
   0x6   :  { %s1549_s19 = smov 0   ;;  %s1551_s20 = smov 0  }
   0x7 LB: > { %s1570_s21 = sadd.s32 4294967295, %s1507_s20   ;;  %p96_p0 = scmp.ne.s32.totalorder %s1491_s16, %s1487_s15  ;;  %s1507_s20 = sphi %s1551_s20, %s17_s20   ;;  %s1503_s19 = sphi %s1549_s19, %s1727_s19   ;;  %s1499_s18 = sphi %s1547_s18, %s1726_s18   ;;  %s1495_s17 = sphi %s1545_s17, %s1725_s17   ;;  %s1491_s16 = sphi %s1543_s16, %s1724_s16   ;;  %s1487_s15 = sphi %s1541_s15, %s1723_s15  }
   0x8   : > { %p97_p1 = scmp.eq.s32.totalorder %s1570_s21, 0  ;;  %p915_p2 = scmp.ge.s32.totalorder %s1507_s20, 1 }
   0x9   : > { %p159_p3 = scmp.lt.s32.totalorder %s1507_s20, 4  ;;  %s1716_s0 = sld [smem:[#allocation16_spill]] }
   0xa   : > { %p1578_p4 = por %p97_p1, %p96_p0  ;;  %s1509_s27 = smov [#allocation4]  }
   0xb   : > { %p1585_p5 = pnand %p915_p2, %p159_p3  ;;  %s172_s28 = sshll.u32 %s1509_s27, 4  ;;  %s173_s28 = int_to_ptr.vmem [resolvable:$true] %s172_s28 }
   0xc   : > { %s1710_s30 = smov 64   ;;  %s1712_s5 = smov 4  }
   0xd   : > { %p1220_p6 = pneg %p1585_p5  ;;  %s29_s6 = sadd.s32 1, %s1503_s19 }
   0xe   : > { %p31_p8 = scmp.ge.s32.totalorder %s29_s6, 3  ;;  %s83_s7 = sadd.s32 1, %s1495_s17 }
   0xf   : > { %s170_s25 = sshll.u32 %s1716_s0, 4  ;;  %p1593_p7 = pnand %p1220_p6, %p97_p1  ;;  %s171_s25 = int_to_ptr.hbm [resolvable:$true] %s170_s25 }
  0x10   : > { %p90_p9 = scmp.ne.s32.totalorder %s1495_s17, %s1491_s16  ;;  %p91_p10 = scmp.eq.s32.totalorder %s1507_s20, 0 }
  0x11   : > { %1223 = dma.hbm_to_vmem [thread:$0]  (!%p1593_p7), %s171_s25, 1024, %s173_s28, [#allocation5], %s1710_s30, %s1710_s30, %s1712_s5  }
  0x12   : > { %s1729_s6 = smov (%p31_p8, %s29_s6), 0  ;;  %p1609_p11 = por %p91_p10, %p90_p9 }
  0x13   : > { %p1236_p12 = scmp.lt.s32.totalorder %s1507_s20, 3  ;;  %s80_s9 = ssub.s32 %s1503_s19, %s1729_s6 }
  0x14   : > { %s203_s10 = sand.u32 1, %s1507_s20   ;;  %p81_p13 = scmp.eq.s32.totalorder %s80_s9, 0 }
  0x15   : > { %s205_s11 = sand.u32 1, %s1495_s17   ;;  %s1060_s12 = sshll.u32 %s1503_s19, 6 }
  0x16   : > { %s1620_s13 = scalar_select %p81_p13, %s1495_s17, %s83_s7  }
  0x17   : > { %s919_s14 = sshll.u32 %s205_s11, 6  ;;  %s212_s24 = scalar_lea.hbm %s1707_s2, %s1060_s12 }
  0x18   : > { %s213_s25 = sshll.u32 %s212_s24, 4  ;;  %s207_s27 = scalar_lea.vmem [#allocation9], %s919_s14  ;;  %s214_s25 = int_to_ptr.hbm [resolvable:$true] %s213_s25 }
  0x19   : > { %s215_s28 = sshll.u32 %s207_s27, 4  ;;  %p1629_p0 = pnand %p1236_p12, %p1609_p11  ;;  %s216_s28 = int_to_ptr.vmem [resolvable:$true] %s215_s28 }
  0x1a   : > { %s187_s5 = sshll.u32 %s1706_s1, 4  ;;  %s204_s15 = scalar_lea.sflag [#allocation5], %s203_s10  ;;  %s188_s5 = int_to_ptr.hbm [resolvable:$true] %s187_s5 }
  0x1b   : > { %s1721_s12 = smov 4   ;;  %s1722_s23 = smov 64  }
  0x1c   : > { %1230 = dma.hbm_to_vmem [thread:$0]  (!%p1629_p0), %s214_s25, 1024, %s216_s28, %s204_s15, %s1722_s23, %s1722_s23, %s1721_s12  }
  0x1d   : > { %s1512_s14 = smov [#allocation7]   ;;  %s231_s0 = scalar_lea.hbm %s1708_s3, %s1503_s19 }
  0x1e   : > { %s189_s8 = sshll.u32 %s1512_s14, 4  ;;  %s233_s30 = sshll.u32 %s231_s0, 4  ;;  %s190_s8 = int_to_ptr.vmem [resolvable:$true] %s189_s8  ;;  %s234_s30 = int_to_ptr.hbm [resolvable:$true] %s233_s30 }
  0x1f   : > { %1226 = dma.hbm_to_vmem [thread:$0]  (!%p1593_p7), %s188_s5, 1024, %s190_s8, [#allocation8], %s1722_s23, %s1722_s23, %s1721_s12  }
  0x20   : > { %s228_s7 = scalar_lea.vmem [#allocation10], %s205_s11  ;;  %244 = sbr.rel (%p1585_p5) target bundleno = 532 (0x214), region = 36 }
  0x21   : > { %s235_s10 = sshll.u32 %s228_s7, 4  ;;  %s236_s10 = int_to_ptr.vmem [resolvable:$true] %s235_s10 }
  0x22   : > { %1233 = dma.hbm_to_vmem [thread:$0]  (!%p1629_p0), %s234_s30, 16, %s236_s10, %s204_s15  }
  0x25   : > { %1470 = dma.done.wait (%p97_p1), [#allocation5], 1024  }
  0x26   : > { %1472 = vsyncadd (%p97_p1), [#allocation5], 4294966272 }
  0x27   : > { %1474 = dma.done.wait (%p97_p1), [#allocation8], 1024  }
  0x28   : > { %1476 = vsyncadd (%p97_p1), [#allocation8], 4294966272  ;;  %s256_s0 = sand.u32 1, %s1570_s21   ;;  %s258_s29 = sand.u32 1, %s1491_s16  }
  0x29   : > { %s925_s5 = sshll.u32 %s258_s29, 6  ;;  %s257_s26 = scalar_lea.sflag [#allocation5], %s256_s0 }
  0x2a   : > { %s1664_s11 = scalar_lea.vmem [#allocation9], %s925_s5 }
  0x2b   : > { %1478 = dma.done.wait (%p1578_p4), %s257_s26, 1040  }
  0x2c   : > { %1480 = vsyncadd (%p1578_p4), %s257_s26, 4294966256  ;;  %p296_p2 = scmp.eq.s32.totalorder %s1499_s18, 0  ;;  %s1671_s25 = scalar_lea.vmem [#allocation10], %s258_s29 }
  0x2d   : > { %v302_v0 = vld [vmem:[#allocation4] sm:$0xff] (%p296_p2)   ;;  %v304_v1 = vld [vmem:[#allocation4 + $0x8] sm:$0xff] (%p296_p2)   ;;  %v306_v2 = vld [vmem:[#allocation4 + $0x10] sm:$0xff] (%p296_p2)  }
  0x2e   : > { %301 = sbr.rel (!%p296_p2) target bundleno = 54 (0x36), region = 56  ;;  %318 = vst [vmem:[#allocation2] sm:$0xff] (%p296_p2), %v302_v0   ;;  %v308_v3 = vld [vmem:[#allocation4 + $0x18] sm:$0xff] (%p296_p2)   ;;  %v310_v4 = vld [vmem:[#allocation4 + $0x20] sm:$0xff] (%p296_p2)   ;;  %v312_v5 = vld [vmem:[#allocation4 + $0x28] sm:$0xff] (%p296_p2)  }
  0x2f   : > { %320 = vst [vmem:[#allocation2 + $0x8] sm:$0xff] (%p296_p2), %v304_v1   ;;  %v314_v6 = vld [vmem:[#allocation4 + $0x30] sm:$0xff] (%p296_p2)   ;;  %v316_v7 = vld [vmem:[#allocation4 + $0x38] sm:$0xff] (%p296_p2)  }
  0x30   : > { %322 = vst [vmem:[#allocation2 + $0x10] sm:$0xff] (%p296_p2), %v306_v2  }
  0x31   : > { %324 = vst [vmem:[#allocation2 + $0x18] sm:$0xff] (%p296_p2), %v308_v3  }
  0x32   : > { %326 = vst [vmem:[#allocation2 + $0x20] sm:$0xff] (%p296_p2), %v310_v4  }
  0x33   : > { %328 = vst [vmem:[#allocation2 + $0x28] sm:$0xff] %v312_v5  }
  0x34   : > { %330 = vst [vmem:[#allocation2 + $0x30] sm:$0xff] %v314_v6  }
  0x35   : > { %332 = vst [vmem:[#allocation2 + $0x38] sm:$0xff] %v316_v7  }
  0x36 PF: > { %v1077_v8 = vld [vmem:[%s1664_s11 + $0x38] sm:$0xff]  ;;  %v1076_v9 = vld [vmem:[%s1664_s11 + $0x30] sm:$0xff]  ;;  %v1075_v10 = vld [vmem:[%s1664_s11 + $0x28] sm:$0xff]  ;;  %p1055_p1 = scmp.ne.s32.totalorder %s1499_s18, 2 }
  0x37   : > { %1188 = vmatpush.bf16.msra.mxu2 %v1077_v8  ;;  %469 = vmatpush.bf16.msra.mxu0 %v1077_v8  ;;  %v1074_v11 = vld [vmem:[%s1664_s11 + $0x20] sm:$0xff]  ;;  %v1073_v12 = vld [vmem:[%s1664_s11 + $0x18] sm:$0xff]  ;;  %v1072_v13 = vld [vmem:[%s1664_s11 + $0x10] sm:$0xff] }
  0x38   : > { %v1071_v14 = vld [vmem:[%s1664_s11 + $0x8] sm:$0xff]  ;;  %v1070_v15 = vld [vmem:[%s1664_s11] sm:$0xff] }
  0x39   : > { %v1062_v17 = vld [vmem:[#allocation2] sm:$0xff]  ;;  %v1063_v19 = vld [vmem:[#allocation2 + $0x8] sm:$0xff] }
  0x3a   : > { %v1064_v21 = vld [vmem:[#allocation2 + $0x10] sm:$0xff]  ;;  %v1296_v25 = vld [vmem:[%s1671_s25] ss:$0 sm:$0xff] }
  0x3b   : > { %1189 = vmatpush.bf16.msra.mxu2 %v1076_v9  ;;  %470 = vmatpush.bf16.msra.mxu0 %v1076_v9  ;;  %v1068_v20 = vld [vmem:[#allocation2 + $0x30] sm:$0xff]  ;;  %v1065_v23 = vld [vmem:[#allocation2 + $0x18] sm:$0xff]  ;;  %v1078_v9 = vld [vmem:[#allocation7] sm:$0xff] }
  0x3c   : > { %v1066_v16 = vld [vmem:[#allocation2 + $0x20] sm:$0xff]  ;;  %v1069_v22 = vld [vmem:[#allocation2 + $0x38] sm:$0xff] }
  0x3d   : > { %v1067_v18 = vld [vmem:[#allocation2 + $0x28] sm:$0xff] }
  0x3f   : > { %1190 = vmatpush.bf16.msra.mxu2 %v1075_v10  ;;  %471 = vmatpush.bf16.msra.mxu0 %v1075_v10  ;;  %v1082_v10 = vld [vmem:[#allocation7 + $0x20] sm:$0xff] }
  0x43   : > { %1191 = vmatpush.bf16.msra.mxu2 %v1074_v11  ;;  %472 = vmatpush.bf16.msra.mxu0 %v1074_v11  ;;  %v1079_v11 = vld [vmem:[#allocation7 + $0x8] sm:$0xff] }
  0x47   : > { %1192 = vmatpush.bf16.msra.mxu2 %v1073_v12  ;;  %473 = vmatpush.bf16.msra.mxu0 %v1073_v12  ;;  %v1083_v12 = vld [vmem:[#allocation7 + $0x28] sm:$0xff] }
  0x4b   : > { %1193 = vmatpush.bf16.msra.mxu2 %v1072_v13  ;;  %474 = vmatpush.bf16.msra.mxu0 %v1072_v13  ;;  %v1080_v13 = vld [vmem:[#allocation7 + $0x10] sm:$0xff] }
  0x4f   : > { %1194 = vmatpush.bf16.msra.mxu2 %v1071_v14  ;;  %475 = vmatpush.bf16.msra.mxu0 %v1071_v14  ;;  %v1084_v14 = vld [vmem:[#allocation7 + $0x30] sm:$0xff] }
  0x53   : > { %1195 = vmatpush.bf16.msra.mxu2 %v1070_v15  ;;  %476 = vmatpush.bf16.msra.mxu0 %v1070_v15  ;;  %v1081_v15 = vld [vmem:[#allocation7 + $0x18] sm:$0xff] }
  0x56   : > { %497 = vmatmul.bf16.vlgmr.msra.gmra.mxu2 %v1066_v16  ;;  %477 = vmatmul.bf16.vlgmr.msra.gmra.mxu0 %v1062_v17  ;;  %v1085_v16 = vld [vmem:[#allocation7 + $0x38] sm:$0xff] }
  0x66   : > { %502 = vmatmul.bf16.gmra.mxu2 %v1067_v18  ;;  %482 = vmatmul.bf16.gmra.mxu0 %v1063_v19 }
  0x76   : > { %507 = vmatmul.bf16.gmra.mxu2 %v1068_v20  ;;  %487 = vmatmul.bf16.gmra.mxu0 %v1064_v21 }
  0x86   : > { %512 = vmatmul.bf16.gmra.mxu2 %v1069_v22  ;;  %492 = vmatmul.bf16.gmra.mxu0 %v1065_v23 }
  0xd3   : > { %v478_v24 = vpop.f32.mrf.mxu0 }
  0xd4   : > { %v479_v27 = vadd.f32 %v1296_v25, %v478_v24 }
  0xd9   : > { %v498_v26 = vpop.f32.mrf.mxu2 }
  0xda   : > { %v499_v32 = vadd.f32 %v1296_v25, %v498_v26 }
  0xdb   : > { %v480_v28 = vpop.f32.mrf.mxu0 }
  0xdc   : > { %v481_v29 = vadd.f32 %v1296_v25, %v480_v28 }
  0xde   : > { %v1097_v30 = vpack.c.bf16 %v481_v29, %v479_v27 }
  0xe0   : > { %1098 = vst [vmem:[#allocation3 + $0x30] sm:$0xff] %v1097_v30  }
  0xe1   : > { %v500_v31 = vpop.f32.mrf.mxu2 }
  0xe2   : > { %v501_v33 = vadd.f32 %v1296_v25, %v500_v31 }
  0xe3   : > { %v483_v34 = vpop.f32.mrf.mxu0 }
  0xe4   : > { %v1117_v35 = vpack.c.bf16 %v501_v33, %v499_v32  ;;  %v484_v37 = vadd.f32 %v1296_v25, %v483_v34 }
  0xe6   : > { %1177 = vst [vmem:[#allocation3 + $0x8] sm:$0xff] %v1117_v35  }
  0xe7   : > { %v1086_v8 = vld [vmem:[#allocation3 + $0x30] sm:$0xff] }
  0xe9   : > { %v503_v36 = vpop.f32.mrf.mxu2 }
  0xea   : > { %v504_v42 = vadd.f32 %v1296_v25, %v503_v36 }
  0xeb   : > { %v485_v38 = vpop.f32.mrf.mxu0 }
  0xec   : > { %v486_v39 = vadd.f32 %v1296_v25, %v485_v38 }
  0xed   : > { %v1090_v4 = vld [vmem:[#allocation3 + $0x8] sm:$0xff] }
  0xee   : > { %v1102_v40 = vpack.c.bf16 %v486_v39, %v484_v37 }
  0xf0   : > { %1174 = vst [vmem:[#allocation3] sm:$0xff] %v1102_v40  }
  0xf1   : > { %v505_v41 = vpop.f32.mrf.mxu2 }
  0xf2   : > { %v506_v43 = vadd.f32 %v1296_v25, %v505_v41 }
  0xf3   : > { %v488_v44 = vpop.f32.mrf.mxu0 }
  0xf4   : > { %v1122_v45 = vpack.c.bf16 %v506_v43, %v504_v42  ;;  %v489_v47 = vadd.f32 %v1296_v25, %v488_v44 }
  0xf6   : > { %1178 = vst [vmem:[#allocation3 + $0x20] sm:$0xff] %v1122_v45  }
  0xf7   : > { %v1087_v7 = vld [vmem:[#allocation3] sm:$0xff] }
  0xf9   : > { %v508_v46 = vpop.f32.mrf.mxu2 }
  0xfa   : > { %v509_v52 = vadd.f32 %v1296_v25, %v508_v46 }
  0xfb   : > { %v490_v48 = vpop.f32.mrf.mxu0 }
  0xfc   : > { %v491_v49 = vadd.f32 %v1296_v25, %v490_v48 }
  0xfd   : > { %v1091_v3 = vld [vmem:[#allocation3 + $0x20] sm:$0xff] }
  0xfe   : > { %v1107_v50 = vpack.c.bf16 %v491_v49, %v489_v47 }
 0x100   : > { %1175 = vst [vmem:[#allocation3 + $0x18] sm:$0xff] %v1107_v50  }
 0x101   : > { %v510_v51 = vpop.f32.mrf.mxu2 }
 0x102   : > { %v511_v53 = vadd.f32 %v1296_v25, %v510_v51 }
 0x103   : > { %v493_v54 = vpop.f32.mrf.mxu0 }
 0x104   : > { %v1127_v55 = vpack.c.bf16 %v511_v53, %v509_v52  ;;  %v494_v57 = vadd.f32 %v1296_v25, %v493_v54 }
 0x106   : > { %1179 = vst [vmem:[#allocation3 + $0x28] sm:$0xff] %v1127_v55  }
 0x107   : > { %v1088_v6 = vld [vmem:[#allocation3 + $0x18] sm:$0xff] }
 0x109   : > { %v513_v56 = vpop.f32.mrf.mxu2 }
 0x10a   : > { %v514_v62 = vadd.f32 %v1296_v25, %v513_v56 }
 0x10b   : > { %v495_v58 = vpop.f32.mrf.mxu0 }
 0x10c   : > { %v496_v59 = vadd.f32 %v1296_v25, %v495_v58 }
 0x10d   : > { %v1092_v2 = vld [vmem:[#allocation3 + $0x28] sm:$0xff] }
 0x10e   : > { %v1112_v60 = vpack.c.bf16 %v496_v59, %v494_v57 }
 0x110   : > { %1176 = vst [vmem:[#allocation3 + $0x10] sm:$0xff] %v1112_v60  }
 0x111   : > { %v515_v61 = vpop.f32.mrf.mxu2 }
 0x112   : > { %v516_v63 = vadd.f32 %v1296_v25, %v515_v61 }
 0x114   : > { %v1132_v0 = vpack.c.bf16 %v516_v63, %v514_v62 }
 0x116   : > { %1180 = vst [vmem:[#allocation3 + $0x38] sm:$0xff] %v1132_v0  }
 0x117   : > { %v1089_v5 = vld [vmem:[#allocation3 + $0x10] sm:$0xff] }
 0x11d   : > { %v1093_v1 = vld [vmem:[#allocation3 + $0x38] sm:$0xff] }
 0x11e   : > { %678 = vmatpush.bf16.msra.mxu1 %v1093_v1  ;;  %1196 = vmatpush.bf16.msra.mxu3 %v1093_v1 }
 0x122   : > { %679 = vmatpush.bf16.msra.mxu1 %v1092_v2  ;;  %1197 = vmatpush.bf16.msra.mxu3 %v1092_v2 }
 0x126   : > { %680 = vmatpush.bf16.msra.mxu1 %v1091_v3  ;;  %1198 = vmatpush.bf16.msra.mxu3 %v1091_v3 }
 0x12a   : > { %681 = vmatpush.bf16.msra.mxu1 %v1090_v4  ;;  %1199 = vmatpush.bf16.msra.mxu3 %v1090_v4 }
 0x12e   : > { %682 = vmatpush.bf16.msra.mxu1 %v1089_v5  ;;  %1200 = vmatpush.bf16.msra.mxu3 %v1089_v5 }
 0x132   : > { %683 = vmatpush.bf16.msra.mxu1 %v1088_v6  ;;  %1201 = vmatpush.bf16.msra.mxu3 %v1088_v6 }
 0x136   : > { %684 = vmatpush.bf16.msra.mxu1 %v1087_v7  ;;  %1202 = vmatpush.bf16.msra.mxu3 %v1087_v7 }
 0x13a   : > { %685 = vmatpush.bf16.msra.mxu1 %v1086_v8  ;;  %1203 = vmatpush.bf16.msra.mxu3 %v1086_v8 }
 0x13d   : > { %686 = vmatmul.bf16.vlgmr.msra.gmra.mxu1 %v1078_v9  ;;  %706 = vmatmul.bf16.vlgmr.msra.gmra.mxu3 %v1082_v10 }
 0x14d   : > { %691 = vmatmul.bf16.gmra.mxu1 %v1079_v11  ;;  %711 = vmatmul.bf16.gmra.mxu3 %v1083_v12 }
 0x15d   : > { %696 = vmatmul.bf16.gmra.mxu1 %v1080_v13  ;;  %716 = vmatmul.bf16.gmra.mxu3 %v1084_v14 }
 0x16d   : > { %701 = vmatmul.bf16.gmra.mxu1 %v1081_v15  ;;  %721 = vmatmul.bf16.gmra.mxu3 %v1085_v16 }
 0x1ba   : > { %v687_v17 = vpop.f32.mrf.mxu1 }
 0x1bb   : > { %v728_v20 = vmax.f32 %v687_v17, 0.0 }
 0x1c0   : > { %v707_v18 = vpop.f32.mrf.mxu3 }
 0x1c1   : > { %v736_v24 = vmax.f32 %v707_v18, 0.0 }
 0x1c2   : > { %v689_v19 = vpop.f32.mrf.mxu1 }
 0x1c3   : > { %v729_v21 = vmax.f32 %v689_v19, 0.0 }
 0x1c5   : > { %v1137_v22 = vpack.c.bf16 %v729_v21, %v728_v20 }
 0x1c7   : > { %1138 = vst [vmem:[#allocation2] sm:$0xff] %v1137_v22  }
 0x1c8   : > { %v709_v23 = vpop.f32.mrf.mxu3 }
 0x1c9   : > { %v737_v25 = vmax.f32 %v709_v23, 0.0 }
 0x1ca   : > { %v692_v26 = vpop.f32.mrf.mxu1 }
 0x1cb   : > { %v1157_v27 = vpack.c.bf16 %v737_v25, %v736_v24  ;;  %v730_v30 = vmax.f32 %v692_v26, 0.0 }
 0x1cd   : > { %1184 = vst [vmem:[#allocation2 + $0x20] sm:$0xff] %v1157_v27  }
 0x1d0   : > { %v712_v28 = vpop.f32.mrf.mxu3 }
 0x1d1   : > { %v738_v34 = vmax.f32 %v712_v28, 0.0 }
 0x1d2   : > { %v694_v29 = vpop.f32.mrf.mxu1 }
 0x1d3   : > { %v731_v31 = vmax.f32 %v694_v29, 0.0 }
 0x1d5   : > { %v1142_v32 = vpack.c.bf16 %v731_v31, %v730_v30 }
 0x1d7   : > { %1181 = vst [vmem:[#allocation2 + $0x8] sm:$0xff] %v1142_v32  }
 0x1d8   : > { %v714_v33 = vpop.f32.mrf.mxu3 }
 0x1d9   : > { %v739_v35 = vmax.f32 %v714_v33, 0.0 }
 0x1da   : > { %v697_v36 = vpop.f32.mrf.mxu1 }
 0x1db   : > { %v1162_v37 = vpack.c.bf16 %v739_v35, %v738_v34  ;;  %v732_v40 = vmax.f32 %v697_v36, 0.0 }
 0x1dd   : > { %1185 = vst [vmem:[#allocation2 + $0x28] sm:$0xff] %v1162_v37  }
 0x1e0   : > { %v717_v38 = vpop.f32.mrf.mxu3 }
 0x1e1   : > { %v740_v44 = vmax.f32 %v717_v38, 0.0 }
 0x1e2   : > { %v699_v39 = vpop.f32.mrf.mxu1 }
 0x1e3   : > { %v733_v41 = vmax.f32 %v699_v39, 0.0 }
 0x1e5   : > { %v1147_v42 = vpack.c.bf16 %v733_v41, %v732_v40 }
 0x1e7   : > { %1182 = vst [vmem:[#allocation2 + $0x10] sm:$0xff] %v1147_v42  }
 0x1e8   : > { %v719_v43 = vpop.f32.mrf.mxu3 }
 0x1e9   : > { %v741_v45 = vmax.f32 %v719_v43, 0.0 }
 0x1ea   : > { %v702_v46 = vpop.f32.mrf.mxu1 }
 0x1eb   : > { %v1167_v47 = vpack.c.bf16 %v741_v45, %v740_v44  ;;  %v734_v50 = vmax.f32 %v702_v46, 0.0 }
 0x1ed   : > { %1186 = vst [vmem:[#allocation2 + $0x30] sm:$0xff] %v1167_v47  }
 0x1f0   : > { %v722_v48 = vpop.f32.mrf.mxu3 }
 0x1f1   : > { %v742_v54 = vmax.f32 %v722_v48, 0.0 }
 0x1f2   : > { %v704_v49 = vpop.f32.mrf.mxu1 }
 0x1f3   : > { %v735_v51 = vmax.f32 %v704_v49, 0.0 }
 0x1f5   : > { %v1152_v52 = vpack.c.bf16 %v735_v51, %v734_v50 }
 0x1f7   : > { %1183 = vst [vmem:[#allocation2 + $0x18] sm:$0xff] %v1152_v52  }
 0x1f8   : > { %v724_v53 = vpop.f32.mrf.mxu3 }
 0x1f9   : > { %v743_v55 = vmax.f32 %v724_v53, 0.0  ;;  %783 = sbr.rel (%p1055_p1) target bundleno = 526 (0x20e), region = 64 }
 0x1fb   : > { %v1172_v56 = vpack.c.bf16 %v743_v55, %v742_v54 }
 0x1fd   : > { %1187 = vst [vmem:[#allocation2 + $0x38] sm:$0xff] %v1172_v56  }
 0x1fe   : > { %784 = vst [vmem:[#allocation11] sm:$0xff] %v687_v17 }
 0x1ff   : > { %785 = vst [vmem:[#allocation11 + $0x8] sm:$0xff] %v689_v19 }
 0x200   : > { %786 = vst [vmem:[#allocation11 + $0x10] sm:$0xff] %v692_v26 }
 0x201   : > { %787 = vst [vmem:[#allocation11 + $0x18] sm:$0xff] %v694_v29 }
 0x202   : > { %788 = vst [vmem:[#allocation11 + $0x20] sm:$0xff] %v697_v36 }
 0x203   : > { %789 = vst [vmem:[#allocation11 + $0x28] sm:$0xff] %v699_v39 }
 0x204   : > { %790 = vst [vmem:[#allocation11 + $0x30] sm:$0xff] %v702_v46 }
 0x205   : > { %791 = vst [vmem:[#allocation11 + $0x38] sm:$0xff] %v704_v49 }
 0x206   : > { %792 = vst [vmem:[#allocation11 + $0x40] sm:$0xff] %v707_v18 }
 0x207   : > { %793 = vst [vmem:[#allocation11 + $0x48] sm:$0xff] %v709_v23 }
 0x208   : > { %794 = vst [vmem:[#allocation11 + $0x50] sm:$0xff] %v712_v28 }
 0x209   : > { %795 = vst [vmem:[#allocation11 + $0x58] sm:$0xff] %v714_v33 }
 0x20a   : > { %796 = vst [vmem:[#allocation11 + $0x60] sm:$0xff] %v717_v38 }
 0x20b   : > { %797 = vst [vmem:[#allocation11 + $0x68] sm:$0xff] %v719_v43 }
 0x20c   : > { %798 = vst [vmem:[#allocation11 + $0x70] sm:$0xff] %v722_v48 }
 0x20d   : > { %799 = vst [vmem:[#allocation11 + $0x78] sm:$0xff] %v724_v53 }
 0x20e PF: > { %p1239_p3 = scmp.eq.s32.totalorder %s1570_s21, 2  ;;  %s810_s28 = sshll.u32 %s1709_s4, 4  ;;  %s811_s28 = int_to_ptr.hbm [resolvable:$true] %s810_s28 }
 0x20f   : > { %s1513_s9 = smov [#allocation11]   ;;  %s1514_s12 = smov 128  }
 0x210   : > { %s808_s15 = sshll.u32 %s1513_s9, 4  ;;  %s1515_s23 = smov 8   ;;  %s809_s15 = int_to_ptr.vmem [resolvable:$true] %s808_s15 }
 0x211   : > { %1217 = dma.vmem_to_hbm [thread:$0]  (%p1239_p3), %s809_s15, 2048, %s811_s28, [#allocation6], %s1514_s12, %s1514_s12, %s1515_s23  }
 0x212   : > { %1482 = dma.done.wait (%p1239_p3), [#allocation6], 2048  }
 0x213   : > { %1484 = vsyncadd (%p1239_p3), [#allocation6], 4294965248 }
 0x214 PF: > { %s17_s20 = sadd.s32 1, %s1507_s20   ;;  %s1723_s15 = smov %s1491_s16 }
 0x215   : > { %p14_p4 = scmp.ge.s32.totalorder %s17_s20, 5   ;;  %s1724_s16 = smov %s1495_s17 }
 0x216   : > { %s1725_s17 = smov %s1620_s13  ;;  %s1726_s18 = smov %s1503_s19 }
 0x217   : > { %s1727_s19 = smov %s1729_s6  ;;  %16 = sbr.rel (!%p14_p4) target bundleno = 7 (0x7), region = 106 }
 0x21c   :  { %827 = vsyncpa [#allocation5], 1 }
 0x21d   :  { %829 = vsyncpa [#allocation5 + $0x1], 1 }
 0x21e   :  { %830 = vsyncpa [#allocation8], 1 }
 0x21f   :  { %831 = vsyncpa [#allocation6], 1 }
 0x220   :  { %833 = vsyncpa [#allocation6 + $0x1], 1 }

</bundles_post_ra>
